<compile_context>
chip_gen: v7x
topology: tpu7x:2x2x1
jax: 0.10.0
libtpu: 0.0.40
codegen_flags: <defaults>
</compile_context>

<pallas_src>
import numpy as np
import jax
import jax.numpy as jnp
from jax.experimental import pallas as pl
from jax.experimental.pallas import tpu as pltpu


def _onehot_gather_kernel(jm_ref, joints_ref, out_ref):
    """out[b, m, :] = joints[b, jm[m], :] via a one-hot MXU contraction.

    jm_ref:     (M, 1) int32, VMEM.
    joints_ref: (TB, J, D), VMEM (one batch tile).
    out_ref:    (TB, M, D), VMEM (one batch tile).
    """
    tb, num_j, _ = joints_ref.shape
    num_m = out_ref.shape[1]

    jm = jm_ref[...]                                                 # (M, 1)
    cols = jax.lax.broadcasted_iota(jnp.int32, (num_m, num_j), 1)    # (M, J)
    onehot = (jm == cols).astype(jnp.float32)                        # exact 0/1

    # Static (unrolled) loop over the batch tile: TB small MXU matmuls.
    for b in range(tb):
        x = joints_ref[b].astype(jnp.float32)                        # (J, D)
        y = jnp.dot(onehot, x, preferred_element_type=jnp.float32)   # (M, D)
        out_ref[b, :, :] = y.astype(out_ref.dtype)


def joint_mapper_forward(joints, joint_maps=None, *, force_pallas=False,
                         batch_tile=8):
    """Pallas equivalent of JointMapper.forward(joints)."""
    if joint_maps is None:
        # Module returns the input unchanged when no map is registered.
        return joints

    joints = jnp.asarray(joints)
    B, J, D = joints.shape

    # Clamp indices so an out-of-range map entry can never read out of bounds
    # (jnp.take clamps identically, so the pure-XLA reference agrees).
    jm = jnp.clip(jnp.asarray(joint_maps, dtype=jnp.int32).reshape(-1), 0, J - 1)
    M = int(jm.shape[0])

    # Tiny problem -> a single fused XLA gather beats any custom kernel
    # (no launch overhead).  ~256 KiB source threshold.
    if not force_pallas and joints.size * joints.dtype.itemsize < (256 << 10):
        return jnp.take(joints, jm, axis=1)

    jm2d = jm.reshape(M, 1)                      # (M, 1) int32 VMEM input
    tb = min(int(batch_tile), B)
    grid = (pl.cdiv(B, tb),)

    grid_spec = pltpu.PrefetchScalarGridSpec(
        num_scalar_prefetch=0,
        grid=grid,
        in_specs=[
            pl.BlockSpec((M, 1), lambda i: (0, 0)),        # index table
            pl.BlockSpec((tb, J, D), lambda i: (i, 0, 0)),  # joints batch tile
        ],
        out_specs=pl.BlockSpec((tb, M, D), lambda i: (i, 0, 0)),
    )

    return pl.pallas_call(
        _onehot_gather_kernel,
        out_shape=jax.ShapeDtypeStruct((B, M, D), joints.dtype),
        grid_spec=grid_spec,
        compiler_params=pltpu.CompilerParams(
            dimension_semantics=("parallel",)),
    )(jm2d, joints)


if __name__ == "__main__":
    key = jax.random.PRNGKey(0)

    # Small shapes consistent with the module: 2 bodies, 16 source joints,
    # 3D coordinates; remap to 8 output joints.
    B, J, D = 2, 16, 3
    joints = jax.random.normal(key, (B, J, D), dtype=jnp.float32)
    joint_maps = np.array([5, 2, 9, 0, 15, 7, 3, 11], dtype=np.int32)

    # Force the Pallas path so the kernel itself is exercised.
    out = joint_mapper_forward(joints, joint_maps, force_pallas=True)
    out = jax.block_until_ready(out)

    expected = jnp.take(joints, jnp.asarray(joint_maps), axis=1)
    assert out.shape == (B, joint_maps.shape[0], D)
    np.testing.assert_allclose(np.asarray(out), np.asarray(expected),
                               rtol=0.0, atol=0.0)

    # Second (slightly larger) configuration: more bodies than the batch tile
    # and more gather indices, exercising the batch grid + partial tiles.
    B2, J2, D2, M2 = 10, 64, 3, 24
    joints2 = jax.random.normal(jax.random.PRNGKey(1), (B2, J2, D2),
                                dtype=jnp.float32)
    jm2 = np.asarray(jax.random.randint(jax.random.PRNGKey(2), (M2,), 0, J2),
                     dtype=np.int32)
    out2 = jax.block_until_ready(
        joint_mapper_forward(joints2, jm2, force_pallas=True))
    np.testing.assert_allclose(
        np.asarray(out2),
        np.asarray(jnp.take(joints2, jnp.asarray(jm2), axis=1)),
        rtol=0.0, atol=0.0)

    # bf16 path (exact 0/1 selection round-trips bf16 exactly).
    joints_bf = joints.astype(jnp.bfloat16)
    out_bf = jax.block_until_ready(
        joint_mapper_forward(joints_bf, joint_maps, force_pallas=True))
    np.testing.assert_allclose(
        np.asarray(out_bf.astype(jnp.float32)),
        np.asarray(jnp.take(joints_bf, jnp.asarray(joint_maps),
                            axis=1).astype(jnp.float32)),
        rtol=0.0, atol=0.0)

    # Small-size fast path (pure XLA gather) and the None-map identity branch.
    out_small = joint_mapper_forward(joints, joint_maps)   # jnp.take dispatch
    np.testing.assert_allclose(np.asarray(out_small), np.asarray(expected))
    ident = joint_mapper_forward(joints, None)
    np.testing.assert_allclose(np.asarray(ident), np.asarray(joints))

    print("KERNEL_OK")
</pallas_src>

<mosaic_0001>
module attributes {stable_mosaic.version = 11 : i64} {
  func.func @_onehot_gather_kernel(%arg0: i32, %arg1: memref<8x1xi32, #tpu.memory_space<vmem>>, %arg2: memref<2x16x3xf32, #tpu.memory_space<vmem>>, %arg3: memref<2x8x3xf32, #tpu.memory_space<vmem>>) attributes {dimension_semantics = [#tpu.dimension_semantics<parallel>], iteration_bounds = array<i64: 1>, scalar_prefetch = 0 : i64, scratch_operands = 0 : i64, tpu.core_type = #tpu.core_type<tc>, window_params = [{pipeline_mode = #tpu.pipeline_mode<synchronous>, transform_indices = @transform_0, window_bounds = array<i64: 8, 1>}, {transform_indices = @transform_1, window_bounds = array<i64: 2, 16, 3>}, {transform_indices = @transform_2, window_bounds = array<i64: 2, 8, 3>}]} {
    %c0 = arith.constant 0 : index
    %c0_0 = arith.constant 0 : index
    %0 = vector.load %arg1[%c0, %c0_0] : memref<8x1xi32, #tpu.memory_space<vmem>>, vector<8x1xi32>
    %1 = tpu.iota {dimensions = array<i32: 1>} : vector<8x16xi32>
    %2 = vector.broadcast %0 : vector<8x1xi32> to vector<8x16xi32>
    %3 = arith.cmpi eq, %2, %1 : vector<8x16xi32>
    %4 = arith.extui %3 : vector<8x16xi1> to vector<8x16xi32>
    %5 = arith.sitofp %4 : vector<8x16xi32> to vector<8x16xf32>
    %c0_1 = arith.constant 0 : index
    %c0_2 = arith.constant 0 : index
    %c0_3 = arith.constant 0 : index
    %6 = vector.load %arg2[%c0_1, %c0_2, %c0_3] : memref<2x16x3xf32, #tpu.memory_space<vmem>>, vector<1x16x3xf32>
    %7 = vector.shape_cast %6 : vector<1x16x3xf32> to vector<16x3xf32>
    %cst = arith.constant dense<0.000000e+00> : vector<8x3xf32>
    %8 = tpu.matmul %5, %7, %cst {dimension_numbers = #tpu.dot_dimension_numbers<[1], [0], [0], [1], [0, 0, 1, 1], [], []>} : vector<8x16xf32>, vector<16x3xf32>, vector<8x3xf32> -> vector<8x3xf32>
    %c0_4 = arith.constant 0 : index
    %c0_5 = arith.constant 0 : index
    %c0_6 = arith.constant 0 : index
    %9 = vector.load %arg3[%c0_4, %c0_5, %c0_6] : memref<2x8x3xf32, #tpu.memory_space<vmem>>, vector<1x8x3xf32>
    %10 = vector.shape_cast %9 : vector<1x8x3xf32> to vector<8x3xf32>
    %11 = vector.shape_cast %8 : vector<8x3xf32> to vector<1x8x3xf32>
    tpu.vector_store %arg3[%c0_4, %c0_5, %c0_6], %11 {strides = array<i32>} : memref<2x8x3xf32, #tpu.memory_space<vmem>>, vector<1x8x3xf32>,
    %c1 = arith.constant 1 : index
    %c0_7 = arith.constant 0 : index
    %c0_8 = arith.constant 0 : index
    %12 = vector.load %arg2[%c1, %c0_7, %c0_8] : memref<2x16x3xf32, #tpu.memory_space<vmem>>, vector<1x16x3xf32>
    %13 = vector.shape_cast %12 : vector<1x16x3xf32> to vector<16x3xf32>
    %cst_9 = arith.constant dense<0.000000e+00> : vector<8x3xf32>
    %14 = tpu.matmul %5, %13, %cst_9 {dimension_numbers = #tpu.dot_dimension_numbers<[1], [0], [0], [1], [0, 0, 1, 1], [], []>} : vector<8x16xf32>, vector<16x3xf32>, vector<8x3xf32> -> vector<8x3xf32>
    %c1_10 = arith.constant 1 : index
    %c0_11 = arith.constant 0 : index
    %c0_12 = arith.constant 0 : index
    %15 = vector.load %arg3[%c1_10, %c0_11, %c0_12] : memref<2x8x3xf32, #tpu.memory_space<vmem>>, vector<1x8x3xf32>
    %16 = vector.shape_cast %15 : vector<1x8x3xf32> to vector<8x3xf32>
    %17 = vector.shape_cast %14 : vector<8x3xf32> to vector<1x8x3xf32>
    tpu.vector_store %arg3[%c1_10, %c0_11, %c0_12], %17 {strides = array<i32>} : memref<2x8x3xf32, #tpu.memory_space<vmem>>, vector<1x8x3xf32>,
    return
  }
  func.func @transform_0(%arg0: i32) -> (i32, i32) {
    %c0_i32 = arith.constant 0 : i32
    %c0_i32_0 = arith.constant 0 : i32
    %c0_i32_1 = arith.constant 0 : i32
    return %c0_i32, %c0_i32_0 : i32, i32
  }
  func.func @transform_1(%arg0: i32) -> (i32, i32, i32) {
    %c0_i32 = arith.constant 0 : i32
    %c0_i32_0 = arith.constant 0 : i32
    %c0_i32_1 = arith.constant 0 : i32
    return %arg0, %c0_i32, %c0_i32_0 : i32, i32, i32
  }
  func.func @transform_2(%arg0: i32) -> (i32, i32, i32) {
    %c0_i32 = arith.constant 0 : i32
    %c0_i32_0 = arith.constant 0 : i32
    %c0_i32_1 = arith.constant 0 : i32
    return %arg0, %c0_i32, %c0_i32_0 : i32, i32, i32
  }
}

</mosaic_0001>

<bundles_post_ra>
// kernel: tpu_custom_call.1
= control target key start
LH: loop header
LB: loop body
LE: loop exit
PB: predicated region body
PF: predicated region fallthrough
CT: control target
= control target key end

     0   :  { %v214_v0 = vmov 0   ;;  %v215_v2 = vmov 0.0|0.0   ;;  %vm216_vm0 = vmmov 0   ;;  %v217_v9 = vmov 0.0   ;;  %s254_s0 = inlined_call_operand.vmem [shape: s32[8,1], index: 0, kind: input, shape index: {}]   ;;  %s255_s1 = inlined_call_operand.vmem [shape: f32[2,16,3], index: 1, kind: input, shape index: {}]   ;;  %s256_s2 = inlined_call_operand.vmem [shape: f32[2,8,3], index: 2, kind: output, shape index: {}]  }
   0x1   :  { %213 = vset.pattern.permute.xlu0 %v214_v0  ;;  %v11_v1 = vld [vmem:[%s254_s0] sm:$0xff]  ;;  %203 = vmatprep.subr.bf16.mxu0 %v215_v2  ;;  %v21_v4 = vld [vmem:[%s255_s1 + $0x8] sm:$0xff]  ;;  %v179_v6 = vld [vmem:[%s255_s1 + $0x10] sm:$0xff]  ;;  %v12_v10 = vlaneseq  ;;  %vm22_vm1 = vcmask 130048   ;;  %vm96_vm3 = vcmask 23552  }
   0x2   :  { %v20_v3 = vld [vmem:[%s255_s1] sm:$0xff]  ;;  %15 = vperm.xlu0 %213, %v11_v1   ;;  %206 = vmatprep.subr.bf16.mxu1 %v215_v2  ;;  %v180_v7 = vld [vmem:[%s255_s1 + $0x18] sm:$0xff] }
   0x3   :  { %v204_v5 = vpack.c.bf16 %v21_v4, %v20_v3  ;;  %v207_v8 = vpack.c.bf16 %v180_v7, %v179_v6  ;;  %193 = vmatprep.mubr.msk.f32.mxu0 %vm216_vm0, %v217_v9  ;;  %200 = vmatprep.mubr.msk.f32.mxu1 %vm216_vm0, %v217_v9  ;;  %v13_v11 = vand.u32 127, %v12_v10 }
   0x5   :  { %205 = vmatpush3.bf16.msra.mxu0 %v204_v5  ;;  %208 = vmatpush3.bf16.msra.mxu1 %v207_v8 }
  0x81   :  { %v16_v12 = vpop.permute.xlu0 %15 }
  0x82   :  { %vm17_vm2 = vcmp.eq.s32.totalorder %v16_v12, %v13_v11 }
  0x83   :  { %v177_v13 = vsel %vm17_vm2, 1.0, %v217_v9 }
  0x84   :  { %194 = vmatmul.mubr.msk.f32.vlgmr.msra.gmra.mrb[0].mxu0 %vm22_vm1, %v177_v13  ;;  %201 = vmatmul.mubr.msk.f32.vlgmr.msra.gmra.mrb[0].mxu1 %vm22_vm1, %v177_v13 }
 0x157   :  { %v92_v14 = vpop.f32.mrb[0].mxu0  ;;  %v167_v15 = vpop.f32.mrb[0].mxu1 }
 0x158   :  { %97 = vst.msk [vmem:[%s256_s2] sm:$0xff] %vm96_vm3, %v92_v14  ;;  %182 = vst.msk [vmem:[%s256_s2 + $0x8] sm:$0xff] %vm96_vm3, %v167_v15  ;;  %v195_v16 = vpop.f32.mrb[1].mxu0  ;;  %v202_v17 = vpop.f32.mrb[1].mxu1 }

</bundles_post_ra>
